<compile_context>
chip_gen: v7x
topology: tpu7x:2x2x1
jax: 0.10.0
libtpu: 0.0.40
codegen_flags: <defaults>
</compile_context>

<pallas_src>
import functools

import jax
import jax.numpy as jnp
from jax import lax
from jax.experimental import pallas as pl
from jax.experimental.pallas import tpu as pltpu


def _round_up(x, m):
    return ((x + m - 1) // m) * m


def _vmem_defaults():
    """(budget_bytes, limit_bytes) sized to the local TPU generation."""
    try:
        cap = pltpu.get_tpu_info().vmem_capacity_bytes
    except Exception:  # noqa: BLE001 - fall back conservatively off-TPU/old jax
        cap = 0
    if cap and cap > 96 * 1024 * 1024:          # 128 MiB parts: v5e / v6e
        return 64 * 1024 * 1024, 100 * 1024 * 1024
    # v7x-class (64 MiB VMEM) or unknown: leave headroom for temporaries.
    return 18 * 1024 * 1024, 56 * 1024 * 1024


def _pick_tiles(n_rows, vocab_size, itemsize, vmem_budget_bytes, n_buffers):
    """Choose (tile_rows, tile_vocab) fitting the VMEM budget."""
    # Rows: as large as useful, multiple of 16 (bf16 sublane packing), but
    # capped so grid_rows >= 4 where possible (2-TC load balance on v7x).
    tile_rows = min(512, _round_up(n_rows, 16))
    tile_rows = min(tile_rows, max(16, _round_up(pl.cdiv(n_rows, 4), 16)))
    tile_rows = max(16, (tile_rows // 16) * 16)

    # Vocab: n_buffers input copies + ~5 f32-sized in-body temporaries per elem.
    bytes_per_elem = n_buffers * itemsize + 5 * 4
    max_elems = max(vmem_budget_bytes // bytes_per_elem, 128 * 16)
    tile_vocab = max_elems // tile_rows
    if tile_vocab >= vocab_size:
        tile_vocab = vocab_size                 # single vocab step (full dim)
    else:
        tile_vocab = max(128, (tile_vocab // 128) * 128)   # lane-dense tiles
    return tile_rows, tile_vocab


def _logits_spec(tile_rows, tile_vocab, n_buffers):
    index_map = lambda i, kv: (i, kv)
    if n_buffers > 2:
        try:
            return pl.BlockSpec((tile_rows, tile_vocab), index_map,
                                pipeline_mode=pl.Buffered(int(n_buffers)))
        except Exception:  # noqa: BLE001 - older jax without pipeline_mode
            pass
    return pl.BlockSpec((tile_rows, tile_vocab), index_map)


def _label_smoothing_kernel(pred_ref, tgt_ref, out_ref,
                            m_sc, l_sc, cs_sc, xt_sc, *,
                            n_rows, tile_rows, tile_vocab, vocab_size,
                            smoothing, ignore_index, mask_cols):
    i = pl.program_id(0)          # row-block (parallel)
    kv = pl.program_id(1)         # vocab-block (arbitrary, reduction)
    n_kv = pl.num_programs(1)

    x = pred_ref[...].astype(jnp.float32)                       # (TM, TV)
    t = tgt_ref[...]                                            # (TM, 1) int32

    # Global column index as a (1, TV) iota; comparisons broadcast against the
    # (TM, 1) target column -> no (TM, TV) int32 temporary is materialized.
    col = kv * tile_vocab + lax.broadcasted_iota(jnp.int32, (1, tile_vocab), 1)

    if mask_cols:
        # Ragged vocab tail: out-of-range lanes read unspecified data; mask to
        # -inf so they vanish from max / exp-sum.
        xm = jnp.where(col < vocab_size, x, -jnp.inf)
    else:
        xm = x

    m_tile = jnp.max(xm, axis=-1, keepdims=True)                # (TM, 1)

    @pl.when(kv == 0)
    def _():
        m_sc[...] = m_tile           # start from the first tile's max (keeps
        l_sc[...] = jnp.zeros_like(l_sc)   # all deltas finite, no 0*inf NaNs)
        cs_sc[...] = jnp.zeros_like(cs_sc)
        xt_sc[...] = jnp.zeros_like(xt_sc)

    m_old = m_sc[...]
    m_new = jnp.maximum(m_old, m_tile)
    delta = m_old - m_new                                       # finite, <= 0
    alpha = jnp.exp(delta)

    # Single fused pass over the loaded tile: exp-sum, centered row-sum and
    # target-logit gather. log_softmax is never materialized over (TM, TV).
    ex = jnp.exp(xm - m_new)                                    # 0 at masked cols
    l_sc[...] = l_sc[...] * alpha + jnp.sum(ex, axis=-1, keepdims=True)

    centered = xm - m_new
    if mask_cols:
        centered = jnp.where(col < vocab_size, centered, 0.0)
    n_prev = (kv * tile_vocab).astype(jnp.float32)              # full prior tiles
    cs_sc[...] = (cs_sc[...] + n_prev * delta
                  + jnp.sum(centered, axis=-1, keepdims=True))

    xt_sc[...] = xt_sc[...] + jnp.sum(jnp.where(col == t, x, 0.0),
                                      axis=-1, keepdims=True)

    m_sc[...] = m_new

    @pl.when(kv == n_kv - 1)
    def _():
        m = m_sc[...]
        lse = jnp.log(l_sc[...])
        lsm_t = xt_sc[...] - m - lse                    # log_softmax[target]
        lsm_sum = cs_sc[...] - vocab_size * lse         # sum_j log_softmax_j

        eps = smoothing / (vocab_size - 1)
        conf = 1.0 - smoothing
        # true_dist is eps everywhere except conf at the target column, so
        #   loss_i = -((conf - eps) * lsm[target_i] + eps * sum_j lsm_j)
        row_loss = -((conf - eps) * lsm_t + eps * lsm_sum)       # (TM, 1)

        # Ragged row tail + ignore_index mask. where() (not multiply) so
        # garbage NaN/Inf rows never reach the partial sum.
        row = i * tile_rows + lax.broadcasted_iota(jnp.int32, (tile_rows, 1), 0)
        valid = jnp.logical_and(t != ignore_index, row < n_rows)

        psum = jnp.sum(jnp.where(valid, row_loss, 0.0)).reshape(1, 1, 1)
        pcnt = jnp.sum(valid.astype(jnp.float32)).reshape(1, 1, 1)

        # Merged lane/sublane-dense partial output: sum in sublane 0, count in
        # sublane 1 (one store per row block).
        sub = lax.broadcasted_iota(jnp.int32, (1, 8, 128), 1)
        out_ref[...] = jnp.where(sub == 0, psum,
                                 jnp.where(sub == 1, pcnt, 0.0))


def label_smoothing_loss(pred, target, *, vocab_size, smoothing=0.05,
                         ignore_index=0, tile_rows=None, tile_vocab=None,
                         vmem_budget_bytes=None, vmem_limit_bytes=None,
                         input_buffers=2):
    """pred: (..., vocab_size) float; target: (...) int. Returns scalar mean loss.

    Feed bf16 logits end-to-end for mem-bound parts (v5e / f32-v6e): the kernel
    upcasts to f32 internally, so never cast in the wrapper (that adds a full
    HBM pass). count == 0 (all targets == ignore_index) yields NaN, matching
    torch.mean over an empty selection.
    """
    pred2d = pred.reshape(-1, vocab_size)
    tgt2d = target.reshape(-1, 1).astype(jnp.int32)
    n = pred2d.shape[0]

    budget_default, limit_default = _vmem_defaults()
    if vmem_budget_bytes is None:
        vmem_budget_bytes = budget_default
    if vmem_limit_bytes is None:
        vmem_limit_bytes = limit_default

    auto_rows, auto_vocab = _pick_tiles(n, vocab_size, pred2d.dtype.itemsize,
                                        vmem_budget_bytes,
                                        max(int(input_buffers), 2))
    tile_rows = int(auto_rows if tile_rows is None else tile_rows)
    tile_vocab = int(auto_vocab if tile_vocab is None else tile_vocab)
    tile_vocab = min(tile_vocab, vocab_size)

    grid_rows = pl.cdiv(n, tile_rows)
    grid_vocab = pl.cdiv(vocab_size, tile_vocab)
    mask_cols = (vocab_size % tile_vocab) != 0

    kernel = functools.partial(
        _label_smoothing_kernel,
        n_rows=n,
        tile_rows=tile_rows,
        tile_vocab=tile_vocab,
        vocab_size=vocab_size,
        smoothing=float(smoothing),
        ignore_index=int(ignore_index),
        mask_cols=mask_cols,
    )

    out = pl.pallas_call(
        kernel,
        out_shape=jax.ShapeDtypeStruct((grid_rows, 8, 128), jnp.float32),
        grid=(grid_rows, grid_vocab),
        in_specs=[
            _logits_spec(tile_rows, tile_vocab, int(input_buffers)),
            pl.BlockSpec((tile_rows, 1), lambda i, kv: (i, 0)),
        ],
        out_specs=pl.BlockSpec((1, 8, 128), lambda i, kv: (i, 0, 0)),
        scratch_shapes=[pltpu.VMEM((tile_rows, 1), jnp.float32)] * 4,
        compiler_params=pltpu.CompilerParams(
            dimension_semantics=("parallel", "arbitrary"),
            vmem_limit_bytes=int(vmem_limit_bytes),
        ),
    )(pred2d, tgt2d)

    total = jnp.sum(out[:, 0, 0])
    count = jnp.sum(out[:, 1, 0])
    return total / count


def _reference(pred, target, *, vocab_size, smoothing=0.05, ignore_index=0):
    pred2d = pred.reshape(-1, vocab_size).astype(jnp.float32)
    tgt1d = target.reshape(-1)
    mask = tgt1d != ignore_index
    eps = smoothing / (vocab_size - 1)
    conf = 1.0 - smoothing
    true_dist = jnp.full_like(pred2d, eps)
    true_dist = true_dist.at[jnp.arange(pred2d.shape[0]), tgt1d].set(conf)
    lsm = jax.nn.log_softmax(pred2d, axis=-1)
    per_row = jnp.sum(-true_dist * lsm, axis=-1)
    return jnp.sum(per_row * mask) / jnp.sum(mask)


if __name__ == "__main__":
    # Primary check: small shapes consistent with the module.
    vocab_size = 32
    batch, seq = 2, 8
    key = jax.random.PRNGKey(0)
    k_pred, k_tgt = jax.random.split(key)
    pred = jax.random.normal(k_pred, (batch, seq, vocab_size), dtype=jnp.float32)
    target = jax.random.randint(k_tgt, (batch, seq), 0, vocab_size, dtype=jnp.int32)
    target = target.at[0, 0].set(0)   # hit ignore_index=0
    target = target.at[1, 3].set(0)

    loss = label_smoothing_loss(pred, target, vocab_size=vocab_size,
                                smoothing=0.05, ignore_index=0)
    loss = jax.block_until_ready(loss)
    ref = _reference(pred, target, vocab_size=vocab_size,
                     smoothing=0.05, ignore_index=0)
    assert jnp.allclose(loss, ref, rtol=1e-5, atol=1e-5), (loss, ref)

    # Multi-block row grid with a ragged row tail (no wrapper pad).
    vocab2 = 128
    batch2, seq2 = 5, 8                 # 40 rows, tile_rows=16 -> 3 row blocks
    k2p, k2t = jax.random.split(jax.random.PRNGKey(1))
    pred2 = jax.random.normal(k2p, (batch2, seq2, vocab2), dtype=jnp.float32)
    target2 = jax.random.randint(k2t, (batch2, seq2), 0, vocab2, dtype=jnp.int32)
    target2 = target2.at[0, 1].set(0)
    target2 = target2.at[4, 7].set(0)
    loss2 = label_smoothing_loss(pred2, target2, vocab_size=vocab2,
                                 smoothing=0.05, ignore_index=0, tile_rows=16)
    loss2 = jax.block_until_ready(loss2)
    ref2 = _reference(pred2, target2, vocab_size=vocab2,
                      smoothing=0.05, ignore_index=0)
    assert jnp.allclose(loss2, ref2, rtol=1e-5, atol=1e-5), (loss2, ref2)

    # Vocab tiling with online accumulation + ragged vocab tail (192 % 128 != 0).
    vocab3 = 192
    batch3, seq3 = 4, 8                 # 32 rows
    k3p, k3t = jax.random.split(jax.random.PRNGKey(2))
    pred3 = jax.random.normal(k3p, (batch3, seq3, vocab3), dtype=jnp.float32)
    target3 = jax.random.randint(k3t, (batch3, seq3), 0, vocab3, dtype=jnp.int32)
    target3 = target3.at[2, 5].set(0)
    loss3 = label_smoothing_loss(pred3, target3, vocab_size=vocab3,
                                 smoothing=0.05, ignore_index=0,
                                 tile_rows=16, tile_vocab=128)
    loss3 = jax.block_until_ready(loss3)
    ref3 = _reference(pred3, target3, vocab_size=vocab3,
                      smoothing=0.05, ignore_index=0)
    assert jnp.allclose(loss3, ref3, rtol=1e-5, atol=1e-5), (loss3, ref3)

    # Vocab tiling, aligned (no column mask) + bf16 logits path.
    vocab4 = 256
    batch4, seq4 = 2, 16                # 32 rows
    k4p, k4t = jax.random.split(jax.random.PRNGKey(3))
    pred4 = jax.random.normal(k4p, (batch4, seq4, vocab4),
                              dtype=jnp.float32).astype(jnp.bfloat16)
    target4 = jax.random.randint(k4t, (batch4, seq4), 0, vocab4, dtype=jnp.int32)
    target4 = target4.at[1, 0].set(0)
    loss4 = label_smoothing_loss(pred4, target4, vocab_size=vocab4,
                                 smoothing=0.05, ignore_index=0,
                                 tile_rows=16, tile_vocab=128)
    loss4 = jax.block_until_ready(loss4)
    ref4 = _reference(pred4, target4, vocab_size=vocab4,
                      smoothing=0.05, ignore_index=0)
    assert jnp.allclose(loss4, ref4, rtol=5e-3, atol=5e-3), (loss4, ref4)

    print("KERNEL_OK")
</pallas_src>

<mosaic_0001>
module attributes {stable_mosaic.version = 11 : i64} {
  func.func @_label_smoothing_kernel(%arg0: i32, %arg1: i32, %arg2: memref<16x32xf32, #tpu.memory_space<vmem>>, %arg3: memref<16x1xi32, #tpu.memory_space<vmem>>, %arg4: memref<1x8x128xf32, #tpu.memory_space<vmem>>, %arg5: memref<16x1xf32, #tpu.memory_space<vmem>>, %arg6: memref<16x1xf32, #tpu.memory_space<vmem>>, %arg7: memref<16x1xf32, #tpu.memory_space<vmem>>, %arg8: memref<16x1xf32, #tpu.memory_space<vmem>>) attributes {dimension_semantics = [#tpu.dimension_semantics<parallel>, #tpu.dimension_semantics<arbitrary>], iteration_bounds = array<i64: 1, 1>, scalar_prefetch = 0 : i64, scratch_operands = 4 : i64, tpu.core_type = #tpu.core_type<tc>, window_params = [{transform_indices = @transform_0, window_bounds = array<i64: 16, 32>}, {transform_indices = @transform_1, window_bounds = array<i64: 16, 1>}, {transform_indices = @transform_2, window_bounds = array<i64: 1, 8, 128>}]} {
    %c0 = arith.constant 0 : index
    %c0_0 = arith.constant 0 : index
    %0 = vector.load %arg2[%c0, %c0_0] : memref<16x32xf32, #tpu.memory_space<vmem>>, vector<16x32xf32>
    %c0_1 = arith.constant 0 : index
    %c0_2 = arith.constant 0 : index
    %1 = vector.load %arg3[%c0_1, %c0_2] : memref<16x1xi32, #tpu.memory_space<vmem>>, vector<16x1xi32>
    %c32_i32 = arith.constant 32 : i32
    %2 = arith.muli %arg1, %c32_i32 : i32
    %3 = tpu.iota {dimensions = array<i32: 1>} : vector<1x32xi32>
    %4 = vector.broadcast %2 : i32 to vector<1x32xi32>
    %5 = arith.addi %4, %3 : vector<1x32xi32>
    %cst = arith.constant dense<0xFF800000> : vector<16xf32>
    %6 = vector.multi_reduction <maximumf>, %0, %cst [1] : vector<16x32xf32> to vector<16xf32>
    %7 = vector.shape_cast %6 : vector<16xf32> to vector<16x1xf32>
    %c0_i32 = arith.constant 0 : i32
    %8 = arith.cmpi eq, %arg1, %c0_i32 : i32
    %9 = arith.extui %8 : i1 to i32
    %c0_i32_3 = arith.constant 0 : i32
    %10 = arith.cmpi ne, %9, %c0_i32_3 : i32
    scf.if %10 {
      %c0_27 = arith.constant 0 : index
      %c0_28 = arith.constant 0 : index
      %50 = vector.load %arg5[%c0_27, %c0_28] : memref<16x1xf32, #tpu.memory_space<vmem>>, vector<16x1xf32>
      tpu.vector_store %arg5[%c0_27, %c0_28], %7 {strides = array<i32>} : memref<16x1xf32, #tpu.memory_space<vmem>>, vector<16x1xf32>,
      %cst_29 = arith.constant 0.000000e+00 : f32
      %51 = vector.broadcast %cst_29 : f32 to vector<16x1xf32>
      %c0_30 = arith.constant 0 : index
      %c0_31 = arith.constant 0 : index
      %52 = vector.load %arg6[%c0_30, %c0_31] : memref<16x1xf32, #tpu.memory_space<vmem>>, vector<16x1xf32>
      tpu.vector_store %arg6[%c0_30, %c0_31], %51 {strides = array<i32>} : memref<16x1xf32, #tpu.memory_space<vmem>>, vector<16x1xf32>,
      %cst_32 = arith.constant 0.000000e+00 : f32
      %53 = vector.broadcast %cst_32 : f32 to vector<16x1xf32>
      %c0_33 = arith.constant 0 : index
      %c0_34 = arith.constant 0 : index
      %54 = vector.load %arg7[%c0_33, %c0_34] : memref<16x1xf32, #tpu.memory_space<vmem>>, vector<16x1xf32>
      tpu.vector_store %arg7[%c0_33, %c0_34], %53 {strides = array<i32>} : memref<16x1xf32, #tpu.memory_space<vmem>>, vector<16x1xf32>,
      %cst_35 = arith.constant 0.000000e+00 : f32
      %55 = vector.broadcast %cst_35 : f32 to vector<16x1xf32>
      %c0_36 = arith.constant 0 : index
      %c0_37 = arith.constant 0 : index
      %56 = vector.load %arg8[%c0_36, %c0_37] : memref<16x1xf32, #tpu.memory_space<vmem>>, vector<16x1xf32>
      tpu.vector_store %arg8[%c0_36, %c0_37], %55 {strides = array<i32>} : memref<16x1xf32, #tpu.memory_space<vmem>>, vector<16x1xf32>,
    } else {
    }
    %c0_4 = arith.constant 0 : index
    %c0_5 = arith.constant 0 : index
    %11 = vector.load %arg5[%c0_4, %c0_5] : memref<16x1xf32, #tpu.memory_space<vmem>>, vector<16x1xf32>
    %12 = arith.maximumf %11, %7 : vector<16x1xf32>
    %13 = arith.subf %11, %12 : vector<16x1xf32>
    %14 = math.exp %13 : vector<16x1xf32>
    %15 = vector.broadcast %12 : vector<16x1xf32> to vector<16x32xf32>
    %16 = arith.subf %0, %15 : vector<16x32xf32>
    %17 = math.exp %16 : vector<16x32xf32>
    %c0_6 = arith.constant 0 : index
    %c0_7 = arith.constant 0 : index
    %18 = vector.load %arg6[%c0_6, %c0_7] : memref<16x1xf32, #tpu.memory_space<vmem>>, vector<16x1xf32>
    %19 = arith.mulf %18, %14 : vector<16x1xf32>
    %cst_8 = arith.constant dense<0.000000e+00> : vector<16xf32>
    %20 = vector.multi_reduction <add>, %17, %cst_8 [1] : vector<16x32xf32> to vector<16xf32>
    %21 = vector.shape_cast %20 : vector<16xf32> to vector<16x1xf32>
    %22 = arith.addf %19, %21 : vector<16x1xf32>
    %c0_9 = arith.constant 0 : index
    %c0_10 = arith.constant 0 : index
    %23 = vector.load %arg6[%c0_9, %c0_10] : memref<16x1xf32, #tpu.memory_space<vmem>>, vector<16x1xf32>
    tpu.vector_store %arg6[%c0_9, %c0_10], %22 {strides = array<i32>} : memref<16x1xf32, #tpu.memory_space<vmem>>, vector<16x1xf32>,
    %24 = vector.broadcast %12 : vector<16x1xf32> to vector<16x32xf32>
    %25 = arith.subf %0, %24 : vector<16x32xf32>
    %c32_i32_11 = arith.constant 32 : i32
    %26 = arith.muli %arg1, %c32_i32_11 : i32
    %27 = arith.sitofp %26 : i32 to f32
    %c0_12 = arith.constant 0 : index
    %c0_13 = arith.constant 0 : index
    %28 = vector.load %arg7[%c0_12, %c0_13] : memref<16x1xf32, #tpu.memory_space<vmem>>, vector<16x1xf32>
    %29 = vector.broadcast %27 : f32 to vector<16x1xf32>
    %30 = arith.mulf %29, %13 : vector<16x1xf32>
    %31 = arith.addf %28, %30 : vector<16x1xf32>
    %cst_14 = arith.constant dense<0.000000e+00> : vector<16xf32>
    %32 = vector.multi_reduction <add>, %25, %cst_14 [1] : vector<16x32xf32> to vector<16xf32>
    %33 = vector.shape_cast %32 : vector<16xf32> to vector<16x1xf32>
    %34 = arith.addf %31, %33 : vector<16x1xf32>
    %c0_15 = arith.constant 0 : index
    %c0_16 = arith.constant 0 : index
    %35 = vector.load %arg7[%c0_15, %c0_16] : memref<16x1xf32, #tpu.memory_space<vmem>>, vector<16x1xf32>
    tpu.vector_store %arg7[%c0_15, %c0_16], %34 {strides = array<i32>} : memref<16x1xf32, #tpu.memory_space<vmem>>, vector<16x1xf32>,
    %c0_17 = arith.constant 0 : index
    %c0_18 = arith.constant 0 : index
    %36 = vector.load %arg8[%c0_17, %c0_18] : memref<16x1xf32, #tpu.memory_space<vmem>>, vector<16x1xf32>
    %37 = vector.broadcast %5 : vector<1x32xi32> to vector<16x32xi32>
    %38 = vector.broadcast %1 : vector<16x1xi32> to vector<16x32xi32>
    %39 = arith.cmpi eq, %37, %38 : vector<16x32xi32>
    %cst_19 = arith.constant 0.000000e+00 : f32
    %40 = vector.broadcast %cst_19 : f32 to vector<16x32xf32>
    %41 = arith.select %39, %0, %40 : vector<16x32xi1>, vector<16x32xf32>
    %cst_20 = arith.constant dense<0.000000e+00> : vector<16xf32>
    %42 = vector.multi_reduction <add>, %41, %cst_20 [1] : vector<16x32xf32> to vector<16xf32>
    %43 = vector.shape_cast %42 : vector<16xf32> to vector<16x1xf32>
    %44 = arith.addf %36, %43 : vector<16x1xf32>
    %c0_21 = arith.constant 0 : index
    %c0_22 = arith.constant 0 : index
    %45 = vector.load %arg8[%c0_21, %c0_22] : memref<16x1xf32, #tpu.memory_space<vmem>>, vector<16x1xf32>
    tpu.vector_store %arg8[%c0_21, %c0_22], %44 {strides = array<i32>} : memref<16x1xf32, #tpu.memory_space<vmem>>, vector<16x1xf32>,
    %c0_23 = arith.constant 0 : index
    %c0_24 = arith.constant 0 : index
    %46 = vector.load %arg5[%c0_23, %c0_24] : memref<16x1xf32, #tpu.memory_space<vmem>>, vector<16x1xf32>
    tpu.vector_store %arg5[%c0_23, %c0_24], %12 {strides = array<i32>} : memref<16x1xf32, #tpu.memory_space<vmem>>, vector<16x1xf32>,
    %c0_i32_25 = arith.constant 0 : i32
    %47 = arith.cmpi eq, %arg1, %c0_i32_25 : i32
    %48 = arith.extui %47 : i1 to i32
    %c0_i32_26 = arith.constant 0 : i32
    %49 = arith.cmpi ne, %48, %c0_i32_26 : i32
    scf.if %49 {
      %c0_27 = arith.constant 0 : index
      %c0_28 = arith.constant 0 : index
      %50 = vector.load %arg5[%c0_27, %c0_28] : memref<16x1xf32, #tpu.memory_space<vmem>>, vector<16x1xf32>
      %c0_29 = arith.constant 0 : index
      %c0_30 = arith.constant 0 : index
      %51 = vector.load %arg6[%c0_29, %c0_30] : memref<16x1xf32, #tpu.memory_space<vmem>>, vector<16x1xf32>
      %52 = math.log %51 : vector<16x1xf32>
      %c0_31 = arith.constant 0 : index
      %c0_32 = arith.constant 0 : index
      %53 = vector.load %arg8[%c0_31, %c0_32] : memref<16x1xf32, #tpu.memory_space<vmem>>, vector<16x1xf32>
      %54 = arith.subf %53, %50 : vector<16x1xf32>
      %55 = arith.subf %54, %52 : vector<16x1xf32>
      %c0_33 = arith.constant 0 : index
      %c0_34 = arith.constant 0 : index
      %56 = vector.load %arg7[%c0_33, %c0_34] : memref<16x1xf32, #tpu.memory_space<vmem>>, vector<16x1xf32>
      %cst_35 = arith.constant 3.200000e+01 : f32
      %57 = vector.broadcast %cst_35 : f32 to vector<16x1xf32>
      %58 = arith.mulf %57, %52 : vector<16x1xf32>
      %59 = arith.subf %56, %58 : vector<16x1xf32>
      %cst_36 = arith.constant 0.948387086 : f32
      %60 = vector.broadcast %cst_36 : f32 to vector<16x1xf32>
      %61 = arith.mulf %60, %55 : vector<16x1xf32>
      %cst_37 = arith.constant 0.0016129032 : f32
      %62 = vector.broadcast %cst_37 : f32 to vector<16x1xf32>
      %63 = arith.mulf %62, %59 : vector<16x1xf32>
      %64 = arith.addf %61, %63 : vector<16x1xf32>
      %cst_38 = arith.constant 0.000000e+00 : f32
      %65 = vector.broadcast %cst_38 : f32 to vector<16x1xf32>
      %66 = arith.subf %65, %64 : vector<16x1xf32>
      %c16_i32 = arith.constant 16 : i32
      %67 = arith.muli %arg0, %c16_i32 : i32
      %68 = tpu.iota {dimensions = array<i32: 0>} : vector<16x1xi32>
      %69 = vector.broadcast %67 : i32 to vector<16x1xi32>
      %70 = arith.addi %69, %68 : vector<16x1xi32>
      %c0_i32_39 = arith.constant 0 : i32
      %71 = vector.broadcast %c0_i32_39 : i32 to vector<16x1xi32>
      %72 = arith.cmpi ne, %1, %71 : vector<16x1xi32>
      %c16_i32_40 = arith.constant 16 : i32
      %73 = vector.broadcast %c16_i32_40 : i32 to vector<16x1xi32>
      %74 = arith.cmpi slt, %70, %73 : vector<16x1xi32>
      %75 = arith.andi %72, %74 : vector<16x1xi1>
      %cst_41 = arith.constant 0.000000e+00 : f32
      %76 = vector.broadcast %cst_41 : f32 to vector<16x1xf32>
      %77 = arith.select %75, %66, %76 : vector<16x1xi1>, vector<16x1xf32>
      %78 = vector.shape_cast %77 : vector<16x1xf32> to vector<1x16x1xf32>
      %cst_42 = arith.constant dense<0.000000e+00> : vector<1xf32>
      %79 = vector.multi_reduction <add>, %78, %cst_42 [1, 2] : vector<1x16x1xf32> to vector<1xf32>
      %80 = vector.shape_cast %79 : vector<1xf32> to vector<1x1x1xf32>
      %81 = vector.extract %80[0, 0, 0] : f32 from vector<1x1x1xf32>
      %82 = vector.broadcast %81 : f32 to vector<1x1x1xf32>
      %83 = arith.extui %75 : vector<16x1xi1> to vector<16x1xi32>
      %84 = arith.sitofp %83 : vector<16x1xi32> to vector<16x1xf32>
      %85 = vector.shape_cast %84 : vector<16x1xf32> to vector<1x16x1xf32>
      %cst_43 = arith.constant dense<0.000000e+00> : vector<1xf32>
      %86 = vector.multi_reduction <add>, %85, %cst_43 [1, 2] : vector<1x16x1xf32> to vector<1xf32>
      %87 = vector.shape_cast %86 : vector<1xf32> to vector<1x1x1xf32>
      %88 = vector.extract %87[0, 0, 0] : f32 from vector<1x1x1xf32>
      %89 = vector.broadcast %88 : f32 to vector<1x1x1xf32>
      %90 = tpu.iota {dimensions = array<i32: 1>} : vector<1x8x128xi32>
      %c0_i32_44 = arith.constant 0 : i32
      %91 = vector.broadcast %c0_i32_44 : i32 to vector<1x8x128xi32>
      %92 = arith.cmpi eq, %90, %91 : vector<1x8x128xi32>
      %c1_i32 = arith.constant 1 : i32
      %93 = vector.broadcast %c1_i32 : i32 to vector<1x8x128xi32>
      %94 = arith.cmpi eq, %90, %93 : vector<1x8x128xi32>
      %cst_45 = arith.constant 0.000000e+00 : f32
      %95 = vector.shape_cast %89 : vector<1x1x1xf32> to vector<1x1x1xf32>
      %96 = vector.broadcast %95 : vector<1x1x1xf32> to vector<1x8x128xf32>
      %97 = vector.broadcast %cst_45 : f32 to vector<1x8x128xf32>
      %98 = arith.select %94, %96, %97 : vector<1x8x128xi1>, vector<1x8x128xf32>
      %99 = vector.shape_cast %82 : vector<1x1x1xf32> to vector<1x1x1xf32>
      %100 = vector.broadcast %99 : vector<1x1x1xf32> to vector<1x8x128xf32>
      %101 = arith.select %92, %100, %98 : vector<1x8x128xi1>, vector<1x8x128xf32>
      %c0_46 = arith.constant 0 : index
      %c0_47 = arith.constant 0 : index
      %c0_48 = arith.constant 0 : index
      %102 = vector.load %arg4[%c0_46, %c0_47, %c0_48] : memref<1x8x128xf32, #tpu.memory_space<vmem>>, vector<1x8x128xf32>
      tpu.vector_store %arg4[%c0_46, %c0_47, %c0_48], %101 {strides = array<i32>} : memref<1x8x128xf32, #tpu.memory_space<vmem>>, vector<1x8x128xf32>,
    } else {
    }
    return
  }
  func.func @transform_0(%arg0: i32, %arg1: i32) -> (i32, i32) {
    %c0_i32 = arith.constant 0 : i32
    return %arg0, %arg1 : i32, i32
  }
  func.func @transform_1(%arg0: i32, %arg1: i32) -> (i32, i32) {
    %c0_i32 = arith.constant 0 : i32
    %c0_i32_0 = arith.constant 0 : i32
    return %arg0, %c0_i32 : i32, i32
  }
  func.func @transform_2(%arg0: i32, %arg1: i32) -> (i32, i32, i32) {
    %c0_i32 = arith.constant 0 : i32
    %c0_i32_0 = arith.constant 0 : i32
    %c0_i32_1 = arith.constant 0 : i32
    return %arg0, %c0_i32, %c0_i32_0 : i32, i32, i32
  }
}

</mosaic_0001>

<bundles_post_ra>
// kernel: tpu_custom_call.1
= control target key start
LH: loop header
LB: loop body
LE: loop exit
PB: predicated region body
PF: predicated region fallthrough
CT: control target
= control target key end

     0   :  { %vm21_vm0 = vcmask 261120   ;;  %v266_v3 = vmov 0   ;;  %s354_s0 = inlined_call_operand.vmem [shape: f32[16,32], index: 0, kind: input, shape index: {}]   ;;  %s355_s1 = inlined_call_operand.vmem [shape: s32[16,1], index: 1, kind: input, shape index: {}]   ;;  %s356_s2 = inlined_call_operand.hbm [shape: f32[1,8,128], index: 2, kind: output, shape index: {}]  }
   0x1   :  { %v12_v0 = vld [vmem:[%s354_s0] sm:$0xff]  ;;  %v13_v1 = vld [vmem:[%s354_s0 + $0x8] sm:$0xff]  ;;  %229 = vset.pattern.permute.xlu0 %v266_v3  ;;  %228 = vset.pattern.permute.xlu1 %v266_v3 }
   0x2   :  { %v22_v2 = vsel %vm21_vm0, %v12_v0, -inf }
   0x3   :  { %7 = vsyncpa [#allocation7], 0  ;;  %23 = vmax.xlane.f32.xlu0 %v22_v2  ;;  %v25_v4 = vsel %vm21_vm0, %v13_v1, -inf  ;;  %vm32_vm1 = vcmask 7168   ;;  %v267_v5 = vmov 0.0   ;;  %v307_v6 = vld [vmem:[%s355_s1] sm:$0xff]  ;;  %v17_v9 = vlaneseq }
   0x4   :  { %39 = vst.msk [vmem:[#allocation5] sm:$0xff] %vm32_vm1, %v267_v5  ;;  %35 = vst.msk [vmem:[#allocation3] sm:$0xff] %vm32_vm1, %v267_v5  ;;  %v319_v20 = vld [vmem:[%s355_s1 + $0x8] sm:$0xff]  ;;  %vm162_vm4 = vcmp.ne.s32.totalorder %v307_v6, 0  ;;  %s268_s16 = smov [#allocation6]  }
   0x5   :  { %36 = vst.msk [vmem:[#allocation3 + $0x8] sm:$0xff] %vm32_vm1, %v267_v5  ;;  %37 = vst.msk [vmem:[#allocation4] sm:$0xff] %vm32_vm1, %v267_v5  ;;  %v18_v12 = vand.u32 127, %v17_v9  ;;  %vm163_vm5 = vcmp.ne.s32.totalorder %v319_v20, 0  ;;  %s211_s17 = sshll.u32 %s268_s16, 4  ;;  %s212_s17 = int_to_ptr.vmem [resolvable:$true] %s211_s17 }
   0x6   :  { %38 = vst.msk [vmem:[#allocation4 + $0x8] sm:$0xff] %vm32_vm1, %v267_v5  ;;  %40 = vst.msk [vmem:[#allocation5 + $0x8] sm:$0xff] %vm32_vm1, %v267_v5  ;;  %s242_s19 = scalar_lea.vmem %s212_s17, 128  ;;  %p247_p1 = scmp.lt.s32.totalorder %s212_s17, %s212_s17 }
   0x7   :  { %26 = vmax.xlane.f32.xlu0 %v25_v4  ;;  %p243_p0 = scmp.ne.s32.totalorder %s212_s17, %s242_s19  ;;  %p248_p2 = scmp.lt.s32.totalorder %s242_s19, %s242_s19 }
   0x9   :  { %p249_p3 = por %p248_p2, %p247_p1 }
   0xb   :  { %v100_v30 = vld [vmem:[#allocation5] sm:$0xff]  ;;  %p250_p4 = pnand %p249_p3, %p243_p0 }
   0xc   :  { %v67_v42 = vld [vmem:[#allocation3] sm:$0xff]  ;;  %v68_v46 = vld [vmem:[#allocation3 + $0x8] sm:$0xff]  ;;  %v83_v54 = vld [vmem:[#allocation4] sm:$0xff] }
   0xd   :  { %v101_v51 = vld [vmem:[#allocation5 + $0x8] sm:$0xff]  ;;  %v84_v60 = vld [vmem:[#allocation4 + $0x8] sm:$0xff] }
  0x1d   :  { %103 = vperm.xlu0 %229, %v307_v6  }
  0x90   :  { %v24_v7 = vpop.xlane.xlu0 %23 }
  0x91   :  { %33 = vst.msk [vmem:[#allocation2] sm:$0xff] %vm32_vm1, %v24_v7 }
  0x94   :  { %v27_v8 = vpop.xlane.xlu0 %26 }
  0x95   :  { %34 = vst.msk [vmem:[#allocation2 + $0x8] sm:$0xff] %vm32_vm1, %v27_v8 }
  0x98   :  { %v41_v10 = vld [vmem:[#allocation2] sm:$0xff] }
  0x99   :  { %v43_v11 = vmax.f32 %v41_v10, %v24_v7 }
  0x9b   :  { %v45_v13 = vsub.f32 %v41_v10, %v43_v11  ;;  %122 = vst.msk [vmem:[#allocation2] sm:$0xff] %vm32_vm1, %v43_v11  ;;  %53 = vperm.xlu1 %228, %v43_v11  }
  0x9c   :  { %v42_v14 = vld [vmem:[#allocation2 + $0x8] sm:$0xff]  ;;  %v104_v15 = vpop.permute.xlu0 %103 }
  0x9d   :  { %v44_v16 = vmax.f32 %v42_v14, %v27_v8  ;;  %vm108_vm2 = vcmp.eq.s32.totalorder %v18_v12, %v104_v15  ;;  %v47_v39 = vmul.f32 1.442695, %v45_v13  ;;  %v86_v52 = vmul.f32 0.0, %v45_v13 }
  0x9e   :  { %v110_v17 = vsel %vm108_vm2, %v12_v0, 0.0 }
  0x9f   :  { %v46_v18 = vsub.f32 %v42_v14, %v44_v16  ;;  %123 = vst.msk [vmem:[#allocation2 + $0x8] sm:$0xff] %vm32_vm1, %v44_v16  ;;  %58 = vperm.xlu1 %228, %v44_v16   ;;  %v112_v19 = vsel %vm21_vm0, %v110_v17, 0.0  ;;  %v88_v57 = vadd.f32 %v86_v52, %v83_v54 }
  0xa0   :  { %113 = vadd.xlane.f32.xlu0 %v112_v19 }
  0xa1   :  { %v49_v40 = vmul.f32 1.442695, %v46_v18  ;;  %v87_v58 = vmul.f32 0.0, %v46_v18 }
  0xa2   :  { %v127_v4 = vld [vmem:[#allocation2] sm:$0xff] }
  0xa3   :  { %106 = vperm.xlu1 %228, %v319_v20   ;;  %v89_v63 = vadd.f32 %v87_v58, %v84_v60 }
  0xa6   :  { %v128_v14 = vld [vmem:[#allocation2 + $0x8] sm:$0xff] }
 0x11a   :  { %v54_v21 = vpop.permute.xlu1 %53 }
 0x11b   :  { %v61_v22 = vsub.f32 %v12_v0, %v54_v21 }
 0x11d   :  { %v63_v23 = vmul.f32 1.442695, %v61_v22  ;;  %v90_v37 = vsel %vm21_vm0, %v61_v22, 0.0 }
 0x11e   :  { %v59_v24 = vpop.permute.xlu1 %58 }
 0x11f   :  { %230 = vpow2.f32 %v63_v23  ;;  %v62_v25 = vsub.f32 %v13_v1, %v59_v24 }
 0x121   :  { %v65_v26 = vmul.f32 1.442695, %v62_v25  ;;  %v93_v38 = vsel %vm21_vm0, %v62_v25, 0.0 }
 0x122   :  { %v107_v28 = vpop.permute.xlu1 %106 }
 0x123   :  { %232 = vpow2.f32 %v65_v26  ;;  %vm109_vm3 = vcmp.eq.s32.totalorder %v18_v12, %v107_v28 }
 0x124   :  { %v111_v35 = vsel %vm109_vm3, %v13_v1, 0.0  ;;  %234 = vpow2.f32 %v47_v39 }
 0x125   :  { %v115_v36 = vsel %vm21_vm0, %v111_v35, 0.0  ;;  %236 = vpow2.f32 %v49_v40 }
 0x129   :  { %v231_v27 = vpop.eup %230 }
 0x12a   :  { %v71_v29 = vsel %vm21_vm0, %v231_v27, 0.0 }
 0x12b   :  { %72 = vadd.xlane.f32.xlu1 %v71_v29 }
 0x12d   :  { %v233_v31 = vpop.eup %232  ;;  %v114_v32 = vpop.xlane.xlu0 %113 }
 0x12e   :  { %v118_v33 = vadd.f32 %v114_v32, %v100_v30  ;;  %v74_v34 = vsel %vm21_vm0, %v233_v31, 0.0  ;;  %v235_v41 = vpop.eup %234 }
 0x12f   :  { %75 = vadd.xlane.f32.xlu1 %v74_v34  ;;  %v69_v43 = vmul.f32 %v235_v41, %v67_v42  ;;  %v237_v44 = vpop.eup %236  ;;  %v220_v34 = vsel %vm163_vm5, 1.0, %v267_v5 }
 0x130   :  { %120 = vst.msk [vmem:[#allocation5] sm:$0xff] %vm32_vm1, %v118_v33  ;;  %v70_v48 = vmul.f32 %v237_v44, %v68_v46  ;;  %v219_v33 = vsel %vm162_vm4, 1.0, %v267_v5  ;;  %v187_v39 = vsel %vm32_vm1, %v220_v34, 0.0 }
 0x133   :  { %116 = vadd.xlane.f32.xlu1 %v115_v36 }
 0x137   :  { %91 = vadd.xlane.f32.xlu1 %v90_v37  ;;  %v135_v2 = vld [vmem:[#allocation5] sm:$0xff] }
 0x138   :  { %v137_v8 = vsub.f32 %v135_v2, %v127_v4 }
 0x13b   :  { %94 = vadd.xlane.f32.xlu1 %v93_v38  ;;  %v186_v38 = vsel %vm32_vm1, %v219_v33, 0.0 }
 0x13c   :  { %v188_v6 = vadd.f32 %v187_v39, %v186_v38 }
 0x1b8   :  { %v73_v45 = vpop.xlane.xlu1 %72 }
 0x1b9   :  { %v77_v47 = vadd.f32 %v73_v45, %v69_v43 }
 0x1bb   :  { %80 = vst.msk [vmem:[#allocation3] sm:$0xff] %vm32_vm1, %v77_v47 }
 0x1bc   :  { %v76_v49 = vpop.xlane.xlu1 %75 }
 0x1bd   :  { %v78_v50 = vadd.f32 %v76_v49, %v70_v48 }
 0x1bf   :  { %81 = vst.msk [vmem:[#allocation3 + $0x8] sm:$0xff] %vm32_vm1, %v78_v50 }
 0x1c0   :  { %v117_v53 = vpop.xlane.xlu1 %116 }
 0x1c1   :  { %v119_v55 = vadd.f32 %v117_v53, %v101_v51  ;;  %v157_v53 = vshrl.u32 %v17_v9, 7 }
 0x1c2   :  { %v129_v56 = vld [vmem:[#allocation3] sm:$0xff] }
 0x1c3   :  { %121 = vst.msk [vmem:[#allocation5 + $0x8] sm:$0xff] %vm32_vm1, %v119_v55  ;;  %238 = vlog2.f32 %v129_v56  ;;  %vm199_vm6 = vcmp.eq.s32.totalorder %v157_v53, 1  ;;  %vm198_vm7 = vcmp.eq.s32.totalorder %v157_v53, 0 }
 0x1c4   :  { %v92_v59 = vpop.xlane.xlu1 %91 }
 0x1c5   :  { %v96_v61 = vadd.f32 %v92_v59, %v88_v57 }
 0x1c6   :  { %v130_v62 = vld [vmem:[#allocation3 + $0x8] sm:$0xff] }
 0x1c7   :  { %98 = vst.msk [vmem:[#allocation4] sm:$0xff] %vm32_vm1, %v96_v61  ;;  %240 = vlog2.f32 %v130_v62 }
 0x1c8   :  { %v95_v0 = vpop.xlane.xlu1 %94 }
 0x1c9   :  { %v97_v1 = vadd.f32 %v95_v0, %v89_v63 }
 0x1ca   :  { %v136_v10 = vld [vmem:[#allocation5 + $0x8] sm:$0xff] }
 0x1cb   :  { %99 = vst.msk [vmem:[#allocation4 + $0x8] sm:$0xff] %vm32_vm1, %v97_v1  ;;  %v138_v17 = vsub.f32 %v136_v10, %v128_v14 }
 0x1cd   :  { %v239_v3 = vpop.eup %238 }
 0x1ce   :  { %v132_v7 = vmul.f32 0.6931472, %v239_v3  ;;  %v141_v15 = vld [vmem:[#allocation4] sm:$0xff] }
 0x1d0   :  { %v139_v11 = vsub.f32 %v137_v8, %v132_v7  ;;  %v143_v12 = vmul.f32 32.0, %v132_v7 }
 0x1d1   :  { %v241_v13 = vpop.eup %240 }
 0x1d2   :  { %v134_v16 = vmul.f32 0.6931472, %v241_v13  ;;  %v145_v18 = vsub.f32 %v141_v15, %v143_v12  ;;  %v147_v22 = vmul.f32 0.9483871, %v139_v11  ;;  %v142_v24 = vld [vmem:[#allocation4 + $0x8] sm:$0xff] }
 0x1d4   :  { %v140_v19 = vsub.f32 %v138_v17, %v134_v16  ;;  %v144_v21 = vmul.f32 32.0, %v134_v16  ;;  %v149_v23 = vmul.f32 0.0016129032, %v145_v18 }
 0x1d6   :  { %v146_v25 = vsub.f32 %v142_v24, %v144_v21  ;;  %v151_v26 = vadd.f32 %v149_v23, %v147_v22  ;;  %v148_v27 = vmul.f32 0.9483871, %v140_v19 }
 0x1d8   :  { %v150_v28 = vmul.f32 0.0016129032, %v146_v25  ;;  %v153_v29 = vsub.f32 0.0, %v151_v26 }
 0x1da   :  { %v152_v30 = vadd.f32 %v150_v28, %v148_v27  ;;  %v168_v32 = vsel %vm162_vm4, %v153_v29, 0.0 }
 0x1db   :  { %v170_v36 = vsel %vm32_vm1, %v168_v32, 0.0 }
 0x1dc   :  { %v154_v31 = vsub.f32 0.0, %v152_v30 }
 0x1de   :  { %v169_v35 = vsel %vm163_vm5, %v154_v31, 0.0 }
 0x1df   :  { %v171_v37 = vsel %vm32_vm1, %v169_v35, 0.0 }
 0x1e0   :  { %v172_v40 = vadd.f32 %v171_v37, %v170_v36 }
 0x1e2   :  { %173 = vadd.xlane.f32.xlu1 %v172_v40 }
 0x1e6   :  { %189 = vadd.xlane.f32.xlu1 %v188_v6 }
 0x26f   :  { %v174_v20 = vpop.xlane.xlu1 %173 }
 0x270   :  { %v175_v41 = vrot.slane %v174_v20, 4 }
 0x272   :  { %v176_v42 = vadd.f32 %v175_v41, %v174_v20 }
 0x273   :  { %v190_v43 = vpop.xlane.xlu1 %189 }
 0x274   :  { %v177_v44 = vrot.slane %v176_v42, 2  ;;  %v191_v45 = vrot.slane %v190_v43, 4 }
 0x276   :  { %v192_v5 = vadd.f32 %v191_v45, %v190_v43  ;;  %v178_v46 = vadd.f32 %v177_v44, %v176_v42 }
 0x278   :  { %v193_v47 = vrot.slane %v192_v5, 2  ;;  %v179_v48 = vrot.slane %v178_v46, 1 }
 0x27a   :  { %v194_v49 = vadd.f32 %v193_v47, %v192_v5  ;;  %v180_v50 = vadd.f32 %v179_v48, %v178_v46 }
 0x27c   :  { %221 = vpush %v180_v50  ;;  %v195_v51 = vrot.slane %v194_v49, 1 }
 0x27e   :  { %v196_v52 = vadd.f32 %v195_v51, %v194_v49 }
 0x280   :  { %223 = vpush %v196_v52 }
 0x2ad   :  { %s222_s1 = spop %221 }
 0x2ae   :  { %v202_v55 = vstv %s222_s1 }
 0x2b1   :  { %s224_s18 = spop %223 }
 0x2b2   :  { %v200_v54 = vstv %s224_s18 }
 0x2b3   :  { %v201_v56 = vsel %vm199_vm6, %v200_v54, 0.0 }
 0x2b4   :  { %v203_v57 = vsel %vm198_vm7, %v202_v55, %v201_v56 }
 0x2b5   :  { %204 = vst [vmem:[#allocation6] sm:$0xff] %v203_v57 }
 0x2b6   :  { %253 = shalt.err (!%p250_p4)
}
 0x2b7   :  { %s254_s22 = scalar_lea.hbm %s356_s2, 128 }
 0x2b8   :  { %p255_p5 = scmp.ne.s32.totalorder %s356_s2, %s254_s22  ;;  %p258_p6 = scmp.lt.u32.totalorder %s254_s22, %s356_s2 }
 0x2ba   :  { %p260_p7 = pnand %p258_p6, %p255_p5 }
 0x2bc   :  { %263 = shalt.err (!%p260_p7)
}
 0x2bd   :  { %214 = dma.vmem_to_hbm [thread:$0]  %s212_s17, 128, %s356_s2, [#allocation7]  }
 0x2be   :  { %264 = dma.done.wait [#allocation7], 128  }
 0x2bf   :  { %265 = vsyncadd [#allocation7], 4294967168 }
 0x2c0   :  { %218 = vsyncpa [#allocation7], 1 }

</bundles_post_ra>
